<compile_context>
chip_gen: v5e
topology: v5e:2x2
jax: 0.10.0
libtpu: 0.0.40
codegen_flags: <defaults>
</compile_context>

<pallas_src>
import functools

import jax
import jax.numpy as jnp
from jax import lax
from jax.experimental import pallas as pl
from jax.experimental.pallas import tpu as pltpu

LANES = 128
BLOCK_ROWS = 2048      # (2048, 128) f32 block = 1 MiB -> near HBM roofline
NUM_SPLITS = 2         # megacore split for v7x; harmless on 1-TC chips


def _round_up(x: int, m: int) -> int:
    return ((x + m - 1) // m) * m


def _entropy_kernel(p_ref, o_ref, *, total_rows, block_rows, steps_per_split,
                    needs_mask):
    # Grid = (core_split, reduction_steps). Output block index depends only on
    # the parallel axis, so o_ref is resident in VMEM across the reduction axis
    # and acts as a lane-wide accumulator.
    j = pl.program_id(1)

    @pl.when(j == 0)
    def _init():
        o_ref[...] = jnp.zeros_like(o_ref)

    p = p_ref[...].astype(jnp.float32)
    # NOTE: p == 0 -> 0 * log(0) = NaN, intentionally matching the PyTorch ref.
    x = p * jnp.log(p)

    if needs_mask:
        # Mask rows beyond the true extent (ragged last block and/or whole
        # blocks introduced by the core split). Select-before-sum, so garbage
        # VMEM contents (possibly NaN after log) never reach the accumulator.
        c = pl.program_id(0)
        blk = c * steps_per_split + j          # logical (unclamped) block id
        row_start = blk * block_rows
        row_ids = row_start + lax.broadcasted_iota(jnp.int32, x.shape, 0)
        x = jnp.where(row_ids < total_rows, x, 0.0)

    # Fold the block to a (1, 128) lane-wide partial and accumulate (VPU adds
    # plus a single sublane reduce per 1 MiB block -> negligible).
    o_ref[...] += jnp.sum(x, axis=0, keepdims=True)


def entropy(probs: jax.Array) -> jax.Array:
    """Computes -sum(probs * log(probs)), matching the PyTorch Entropy module."""
    flat = probs.reshape(-1)
    n = flat.shape[0]
    main_rows = n // LANES
    main_elems = main_rows * LANES

    if main_rows == 0:
        # Fewer than 128 elements: plain JAX is the right tool.
        t = flat.astype(jnp.float32)
        return -jnp.sum(t * jnp.log(t))

    # When n % 128 == 0 (common case) this reshape is a free bitcast (no copy).
    slab = flat[:main_elems].reshape(main_rows, LANES)

    block_rows = min(BLOCK_ROWS, _round_up(main_rows, 8))
    num_blocks = pl.cdiv(main_rows, block_rows)
    num_splits = NUM_SPLITS if num_blocks >= NUM_SPLITS else 1
    steps = pl.cdiv(num_blocks, num_splits)
    needs_mask = (main_rows % block_rows != 0) or (num_splits * steps != num_blocks)

    if num_splits * steps == num_blocks:
        in_index_map = lambda c, j: (c * steps + j, 0)
    else:
        # Clamp so the DMA never starts past the array; the in-kernel mask
        # (based on the *logical* block id) zeroes those iterations.
        in_index_map = lambda c, j: (jnp.minimum(c * steps + j, num_blocks - 1), 0)

    kernel = functools.partial(
        _entropy_kernel,
        total_rows=main_rows,
        block_rows=block_rows,
        steps_per_split=steps,
        needs_mask=needs_mask,
    )

    partials = pl.pallas_call(
        kernel,
        out_shape=jax.ShapeDtypeStruct((num_splits, 1, LANES), jnp.float32),
        grid=(num_splits, steps),
        in_specs=[pl.BlockSpec((block_rows, LANES), in_index_map)],
        out_specs=pl.BlockSpec((1, 1, LANES), lambda c, j: (c, 0, 0)),
        compiler_params=pltpu.CompilerParams(
            dimension_semantics=("parallel", "arbitrary"),
        ),
    )(slab)

    result = -jnp.sum(partials)

    if main_elems < n:
        # Ragged tail (< 128 elements): tiny plain-JAX contribution.
        t = flat[main_elems:].astype(jnp.float32)
        result = result - jnp.sum(t * jnp.log(t))
    return result


if __name__ == "__main__":
    key = jax.random.PRNGKey(0)
    k1, k2 = jax.random.split(key)

    # Case 1: NCHW-like tensor (2, 4, 16, 16) -> 2048 elements.
    logits = jax.random.normal(k1, (2, 4, 16, 16), dtype=jnp.float32)
    probs = jax.nn.softmax(logits.reshape(2, -1), axis=-1).reshape(2, 4, 16, 16)
    result = entropy(probs)
    jax.block_until_ready(result)
    ref = -jnp.sum(probs * jnp.log(probs))
    assert jnp.allclose(result, ref, rtol=1e-5, atol=1e-5), (result, ref)

    # Case 2: ragged size (exercises in-kernel masking + scalar tail path).
    logits2 = jax.random.normal(k2, (3, 5, 7, 11), dtype=jnp.float32)
    probs2 = jax.nn.softmax(logits2.reshape(-1), axis=-1).reshape(3, 5, 7, 11)
    result2 = entropy(probs2)
    jax.block_until_ready(result2)
    ref2 = -jnp.sum(probs2 * jnp.log(probs2))
    assert jnp.allclose(result2, ref2, rtol=1e-5, atol=1e-5), (result2, ref2)

    print("KERNEL_OK")
</pallas_src>

<mosaic_0001>
module attributes {stable_mosaic.version = 11 : i64} {
  func.func @_entropy_kernel(%arg0: i32, %arg1: i32, %arg2: memref<16x128xf32, #tpu.memory_space<vmem>>, %arg3: memref<1x1x128xf32, #tpu.memory_space<vmem>>) attributes {dimension_semantics = [#tpu.dimension_semantics<parallel>, #tpu.dimension_semantics<arbitrary>], iteration_bounds = array<i64: 1, 1>, scalar_prefetch = 0 : i64, scratch_operands = 0 : i64, tpu.core_type = #tpu.core_type<tc>, window_params = [{transform_indices = @transform_0, window_bounds = array<i64: 16, 128>}, {transform_indices = @transform_1, window_bounds = array<i64: 1, 1, 128>}]} {
    %c0_i32 = arith.constant 0 : i32
    %0 = arith.cmpi eq, %arg1, %c0_i32 : i32
    %1 = arith.extui %0 : i1 to i32
    %c0_i32_0 = arith.constant 0 : i32
    %2 = arith.cmpi ne, %1, %c0_i32_0 : i32
    scf.if %2 {
      %cst_8 = arith.constant 0.000000e+00 : f32
      %12 = vector.broadcast %cst_8 : f32 to vector<1x1x128xf32>
      %c0_9 = arith.constant 0 : index
      %c0_10 = arith.constant 0 : index
      %c0_11 = arith.constant 0 : index
      %13 = vector.load %arg3[%c0_9, %c0_10, %c0_11] : memref<1x1x128xf32, #tpu.memory_space<vmem>>, vector<1x1x128xf32>
      tpu.vector_store %arg3[%c0_9, %c0_10, %c0_11], %12 {strides = array<i32>} : memref<1x1x128xf32, #tpu.memory_space<vmem>>, vector<1x1x128xf32>,
    } else {
    }
    %c0 = arith.constant 0 : index
    %c0_1 = arith.constant 0 : index
    %3 = vector.load %arg2[%c0, %c0_1] : memref<16x128xf32, #tpu.memory_space<vmem>>, vector<16x128xf32>
    %4 = math.log %3 : vector<16x128xf32>
    %5 = arith.mulf %3, %4 : vector<16x128xf32>
    %c0_2 = arith.constant 0 : index
    %c0_3 = arith.constant 0 : index
    %c0_4 = arith.constant 0 : index
    %6 = vector.load %arg3[%c0_2, %c0_3, %c0_4] : memref<1x1x128xf32, #tpu.memory_space<vmem>>, vector<1x1x128xf32>
    %cst = arith.constant dense<0.000000e+00> : vector<128xf32>
    %7 = vector.multi_reduction <add>, %5, %cst [0] : vector<16x128xf32> to vector<128xf32>
    %8 = vector.shape_cast %7 : vector<128xf32> to vector<1x128xf32>
    %9 = vector.shape_cast %8 : vector<1x128xf32> to vector<1x1x128xf32>
    %10 = arith.addf %6, %9 : vector<1x1x128xf32>
    %c0_5 = arith.constant 0 : index
    %c0_6 = arith.constant 0 : index
    %c0_7 = arith.constant 0 : index
    %11 = vector.load %arg3[%c0_5, %c0_6, %c0_7] : memref<1x1x128xf32, #tpu.memory_space<vmem>>, vector<1x1x128xf32>
    tpu.vector_store %arg3[%c0_5, %c0_6, %c0_7], %10 {strides = array<i32>} : memref<1x1x128xf32, #tpu.memory_space<vmem>>, vector<1x1x128xf32>,
    return
  }
  func.func @transform_0(%arg0: i32, %arg1: i32) -> (i32, i32) {
    %c1_i32 = arith.constant 1 : i32
    %0 = arith.muli %arg0, %c1_i32 : i32
    %1 = arith.addi %0, %arg1 : i32
    %c0_i32 = arith.constant 0 : i32
    %c0_i32_0 = arith.constant 0 : i32
    return %1, %c0_i32 : i32, i32
  }
  func.func @transform_1(%arg0: i32, %arg1: i32) -> (i32, i32, i32) {
    %c0_i32 = arith.constant 0 : i32
    %c0_i32_0 = arith.constant 0 : i32
    %c0_i32_1 = arith.constant 0 : i32
    return %arg0, %c0_i32, %c0_i32_0 : i32, i32, i32
  }
}

</mosaic_0001>

<bundles_post_ra>
// kernel: tpu_custom_call.1
= control target key start
LH: loop header
LB: loop body
LE: loop exit
PB: predicated region body
PF: predicated region fallthrough
CT: control target
= control target key end

     0   :  { %6 = vsyncpa [#allocation3], 0  ;;  %s153_s0 = inlined_call_operand.hbm [shape: f32[16,128], index: 0, kind: input, shape index: {}]   ;;  %s154_s1 = inlined_call_operand.hbm [shape: f32[1,1,128], index: 1, kind: output, shape index: {}]  }
   0x1   :  { %7 = vsyncpa [#allocation4], 0  ;;  %s16_s8 = sshll.u32 %s153_s0, 4  ;;  %s132_s9 = smov [#allocation2]   ;;  %s17_s8 = int_to_ptr.hbm [resolvable:$true] %s16_s8 }
   0x2   :  { %s18_s10 = sshll.u32 %s132_s9, 4  ;;  %s133_s11 = smov 128   ;;  %s19_s10 = int_to_ptr.vmem [resolvable:$true] %s18_s10 }
   0x3   :  { %s134_s12 = smov 8  }
   0x4   :  { %24 = dma.hbm_to_vmem [thread:$0]  %s17_s8, 256, %s19_s10, [#allocation3], %s133_s11, %s133_s11, %s134_s12  }
   0x5   :  { %128 = dma.done.wait [#allocation3], 256  }
   0x6   :  { %129 = vsyncadd [#allocation3], 4294967040  ;;  %v135_v0 = vmov 0.0   ;;  %v36_v1 = vld [vmem:[#allocation2] sm:$0xff]  ;;  %v37_v2 = vld [vmem:[#allocation2 + $0x8] sm:$0xff]  ;;  %s136_s0 = smov [#allocation5]  }
   0x7   :  { %35 = vst [vmem:[#allocation5] sm:$0x1] %v135_v0  ;;  %76 = vlog2.f32 %v36_v1  ;;  %s59_s13 = sshll.u32 %s136_s0, 4  ;;  %s61_s16 = sshll.u32 %s154_s1, 4  ;;  %s60_s13 = int_to_ptr.vmem [resolvable:$true] %s59_s13  ;;  %s62_s16 = int_to_ptr.hbm [resolvable:$true] %s61_s16 }
   0x8   :  { %78 = vlog2.f32 %v37_v2 }
   0xd   :  { %v77_v3 = vpop.eup %76 }
   0xe   :  { %v79_v4 = vpop.eup %78  ;;  %v39_v5 = vmul.f32 0.6931472, %v77_v3  ;;  %v44_v15 = vld [vmem:[#allocation5] sm:$0x1] }
   0xf   :  { %v41_v6 = vmul.f32 0.6931472, %v79_v4 }
  0x10   :  { %v42_v7 = vmul.f32 %v39_v5, %v36_v1 }
  0x11   :  { %v43_v8 = vmul.f32 %v41_v6, %v37_v2 }
  0x13   :  { %v45_v9 = vadd.f32 %v43_v8, %v42_v7 }
  0x15   :  { %v46_v10 = vrot.slane %v45_v9, 4 }
  0x17   :  { %v47_v11 = vadd.f32 %v46_v10, %v45_v9 }
  0x19   :  { %v48_v12 = vrot.slane %v47_v11, 2 }
  0x1b   :  { %v49_v13 = vadd.f32 %v48_v12, %v47_v11 }
  0x1d   :  { %v50_v14 = vrot.slane %v49_v13, 1 }
  0x1f   :  { %v51_v16 = vadd.f32 %v50_v14, %v49_v13 }
  0x21   :  { %v52_v17 = vadd.f32 %v51_v16, %v44_v15 }
  0x23   :  { %53 = vst [vmem:[#allocation5] sm:$0x1] %v52_v17 }
  0x24   :  { %64 = dma.vmem_to_hbm [thread:$0]  %s60_s13, 16, %s62_s16, [#allocation4]  }
  0x25   :  { %130 = dma.done.wait [#allocation4], 16  }
  0x26   :  { %131 = vsyncadd [#allocation4], 4294967280 }
  0x27   :  { %69 = vsyncpa [#allocation3], 1 }
  0x28   :  { %70 = vsyncpa [#allocation4], 1 }

</bundles_post_ra>
